<compile_context>
chip_gen: v7x
topology: tpu7x:2x2x1
jax: 0.10.0
libtpu: 0.0.40
codegen_flags: <defaults>
</compile_context>

<pallas_src>
import jax
import jax.numpy as jnp
from jax.experimental import pallas as pl
from jax.experimental.pallas import tpu as pltpu

INPUT_SIZE = 768            # matches the module's `input_size`
DEFAULT_BLOCK_ROWS = 2048   # 6 MiB f32 per x buffer; 12 MiB double-buffered
VMEM_LIMIT_BYTES = 32 * 1024 * 1024   # headroom on all of v5e/v6e/v7x


def _round_up(n, m):
    return ((n + m - 1) // m) * m


def _linear_sigmoid_kernel(x_ref, w_ref, b_ref, o_ref):
    # x_ref: (TM, D) VMEM   w_ref: (1, D) VMEM (lane-dense)   b_ref: (1, 1) SMEM
    # o_ref: (TM, 1) VMEM
    x = x_ref[...]
    w = w_ref[...]
    b = b_ref[0, 0]
    # GEMV: VPU multiply + cross-lane reduce (MXU with N=1 would be 1/128 utilized).
    z = jnp.sum(x * w, axis=-1, keepdims=True) + b
    # sigmoid(z) = 1 / (1 + exp(-z)); exp and approx reciprocal both go to EUP.
    o_ref[...] = pl.reciprocal(1.0 + jnp.exp(-z), approx=True).astype(o_ref.dtype)


def net_forward(x, w, b, *, block_rows=DEFAULT_BLOCK_ROWS):
    """Pallas equivalent of Net.forward: sigmoid(x @ w + b).

    x: (B, D) f32
    w: (D, 1) f32 (PyTorch fc.weight transposed); reshaped lane-dense internally
    b: scalar / (1,) / (1, 1) f32
    returns: (B, 1) f32
    """
    B, D = x.shape
    w_row = jnp.asarray(w, x.dtype).reshape(1, D)   # lane-dense weight layout
    b_2d = jnp.asarray(b, x.dtype).reshape(1, 1)

    # Batch tile: multiple of 8 sublanes, capped at block_rows.
    tm = min(block_rows, _round_up(B, 8))
    b_pad = _round_up(B, tm)
    if b_pad != B:
        x = jnp.pad(x, ((0, b_pad - B), (0, 0)))    # padded rows sliced off below

    out = pl.pallas_call(
        _linear_sigmoid_kernel,
        out_shape=jax.ShapeDtypeStruct((b_pad, 1), x.dtype),
        grid=(b_pad // tm,),
        in_specs=[
            pl.BlockSpec((tm, D), lambda i: (i, 0)),            # streamed + double-buffered
            pl.BlockSpec((1, D), lambda i: (0, 0)),             # weight stays resident
            pl.BlockSpec(memory_space=pltpu.SMEM),              # bias scalar in SMEM
        ],
        out_specs=pl.BlockSpec((tm, 1), lambda i: (i, 0)),
        compiler_params=pltpu.CompilerParams(
            dimension_semantics=("parallel",),                  # shard batch tiles over TCs (v7x)
            vmem_limit_bytes=VMEM_LIMIT_BYTES,                  # fit 2048-row double buffer on v5e too
        ),
    )(x, w_row, b_2d)
    return out[:B]


def reference_forward(x, w, b):
    return jax.nn.sigmoid(x @ jnp.asarray(w).reshape(-1, 1) + jnp.asarray(b).reshape(1, 1))


if __name__ == "__main__":
    key = jax.random.PRNGKey(0)
    kx, kw, kb, kx2, kx3 = jax.random.split(key, 5)

    D = INPUT_SIZE
    # Deterministic params mimicking nn.Linear's uniform(-1/sqrt(D), 1/sqrt(D)) init.
    bound = 1.0 / jnp.sqrt(jnp.float32(D))
    w = jax.random.uniform(kw, (D, 1), dtype=jnp.float32, minval=-bound, maxval=bound)
    b = jax.random.uniform(kb, (1, 1), dtype=jnp.float32, minval=-bound, maxval=bound)

    # Small primary case (single tile, grid=(1,)).
    B = 8
    x = jax.random.normal(kx, (B, D), dtype=jnp.float32)
    out = net_forward(x, w, b)
    jax.block_until_ready(out)
    ref = reference_forward(x, w, b)
    assert out.shape == (B, 1)
    assert jnp.allclose(out, ref, atol=2e-3, rtol=2e-3), float(jnp.max(jnp.abs(out - ref)))

    # Multi-step grid + padding with a tiny tile (B not a multiple of the tile).
    B2 = 20
    x2 = jax.random.normal(kx2, (B2, D), dtype=jnp.float32)
    out2 = net_forward(x2, w, b, block_rows=16)   # tm=16 -> pad to 32, grid=(2,)
    jax.block_until_ready(out2)
    ref2 = reference_forward(x2, w, b)
    assert out2.shape == (B2, 1)
    assert jnp.allclose(out2, ref2, atol=2e-3, rtol=2e-3), float(jnp.max(jnp.abs(out2 - ref2)))

    # Default 2048-row tile path with padding (exercises the VMEM budget + pipeline).
    B3 = 4000
    x3 = jax.random.normal(kx3, (B3, D), dtype=jnp.float32)
    out3 = net_forward(x3, w, b)                  # tm=2048 -> pad to 4096, grid=(2,)
    jax.block_until_ready(out3)
    ref3 = reference_forward(x3, w, b)
    assert out3.shape == (B3, 1)
    assert jnp.allclose(out3, ref3, atol=2e-3, rtol=2e-3), float(jnp.max(jnp.abs(out3 - ref3)))

    print("KERNEL_OK")
</pallas_src>

<mosaic_0001>
module attributes {stable_mosaic.version = 11 : i64} {
  func.func @_linear_sigmoid_kernel(%arg0: i32, %arg1: memref<8x768xf32, #tpu.memory_space<vmem>>, %arg2: memref<1x768xf32, #tpu.memory_space<vmem>>, %arg3: memref<1x1xf32, #tpu.memory_space<smem>>, %arg4: memref<8x1xf32, #tpu.memory_space<vmem>>) attributes {dimension_semantics = [#tpu.dimension_semantics<parallel>], iteration_bounds = array<i64: 1>, scalar_prefetch = 0 : i64, scratch_operands = 0 : i64, tpu.core_type = #tpu.core_type<tc>, window_params = [{transform_indices = @transform_0, window_bounds = array<i64: 8, 768>}, {pipeline_mode = #tpu.pipeline_mode<synchronous>, transform_indices = @transform_1, window_bounds = array<i64: 1, 768>}, {transform_indices = @transform_2, window_bounds = array<i64: 1, 1>}, {transform_indices = @transform_3, window_bounds = array<i64: 8, 1>}]} {
    %c0 = arith.constant 0 : index
    %c0_0 = arith.constant 0 : index
    %0 = vector.load %arg1[%c0, %c0_0] : memref<8x768xf32, #tpu.memory_space<vmem>>, vector<8x768xf32>
    %c0_1 = arith.constant 0 : index
    %c0_2 = arith.constant 0 : index
    %1 = vector.load %arg2[%c0_1, %c0_2] : memref<1x768xf32, #tpu.memory_space<vmem>>, vector<1x768xf32>
    %c0_3 = arith.constant 0 : index
    %c0_4 = arith.constant 0 : index
    %2 = memref.load %arg3[%c0_3, %c0_4] : memref<1x1xf32, #tpu.memory_space<smem>>
    %3 = vector.broadcast %1 : vector<1x768xf32> to vector<8x768xf32>
    %4 = arith.mulf %0, %3 : vector<8x768xf32>
    %cst = arith.constant dense<0.000000e+00> : vector<8xf32>
    %5 = vector.multi_reduction <add>, %4, %cst [1] : vector<8x768xf32> to vector<8xf32>
    %6 = vector.shape_cast %5 : vector<8xf32> to vector<8x1xf32>
    %7 = vector.broadcast %2 : f32 to vector<8x1xf32>
    %8 = arith.addf %6, %7 : vector<8x1xf32>
    %cst_5 = arith.constant 0.000000e+00 : f32
    %9 = vector.broadcast %cst_5 : f32 to vector<8x1xf32>
    %10 = arith.subf %9, %8 : vector<8x1xf32>
    %11 = math.exp %10 : vector<8x1xf32>
    %cst_6 = arith.constant 1.000000e+00 : f32
    %12 = vector.broadcast %cst_6 : f32 to vector<8x1xf32>
    %13 = arith.addf %12, %11 : vector<8x1xf32>
    %14 = tpu.reciprocal %13 {approx = true} : vector<8x1xf32> -> vector<8x1xf32>
    %c0_7 = arith.constant 0 : index
    %c0_8 = arith.constant 0 : index
    %15 = vector.load %arg4[%c0_7, %c0_8] : memref<8x1xf32, #tpu.memory_space<vmem>>, vector<8x1xf32>
    tpu.vector_store %arg4[%c0_7, %c0_8], %14 {strides = array<i32>} : memref<8x1xf32, #tpu.memory_space<vmem>>, vector<8x1xf32>,
    return
  }
  func.func @transform_0(%arg0: i32) -> (i32, i32) {
    %c0_i32 = arith.constant 0 : i32
    %c0_i32_0 = arith.constant 0 : i32
    return %arg0, %c0_i32 : i32, i32
  }
  func.func @transform_1(%arg0: i32) -> (i32, i32) {
    %c0_i32 = arith.constant 0 : i32
    %c0_i32_0 = arith.constant 0 : i32
    %c0_i32_1 = arith.constant 0 : i32
    return %c0_i32, %c0_i32_0 : i32, i32
  }
  func.func @transform_2(%arg0: i32) -> (i32, i32) {
    %c0_i32 = arith.constant 0 : i32
    %c0_i32_0 = arith.constant 0 : i32
    %c0_i32_1 = arith.constant 0 : i32
    return %c0_i32, %c0_i32_0 : i32, i32
  }
  func.func @transform_3(%arg0: i32) -> (i32, i32) {
    %c0_i32 = arith.constant 0 : i32
    %c0_i32_0 = arith.constant 0 : i32
    return %arg0, %c0_i32 : i32, i32
  }
}

</mosaic_0001>

<bundles_post_ra>
// kernel: tpu_custom_call.1
= control target key start
LH: loop header
LB: loop body
LE: loop exit
PB: predicated region body
PF: predicated region fallthrough
CT: control target
= control target key end

     0   :  { %9 = vsyncpa [#allocation4], 0  ;;  %s122_s12 = smov [#allocation3]   ;;  %s164_s0 = inlined_call_operand.hbm [shape: f32[8,768], index: 0, kind: input, shape index: {}]   ;;  %s165_s1 = inlined_call_operand.vmem [shape: f32[1,768], index: 1, kind: input, shape index: {}]   ;;  %s166_s2 = inlined_call_operand.<no memory space> [shape: f32[1,1], index: 2, kind: input, shape index: {}]   ;;  %s167_s3 = inlined_call_operand.vmem [shape: f32[8,1], index: 3, kind: output, shape index: {}]  }
   0x1   :  { %s16_s13 = sshll.u32 %s122_s12, 4  ;;  %s98_s16 = scalar_lea.hbm %s164_s0, 768  ;;  %s17_s13 = int_to_ptr.vmem [resolvable:$true] %s16_s13 }
   0x2   :  { %p99_p0 = scmp.ne.s32.totalorder %s164_s0, %s98_s16  ;;  %p102_p1 = scmp.lt.u32.totalorder %s98_s16, %s164_s0 }
   0x4   :  { %p104_p2 = pnand %p102_p1, %p99_p0 }
   0x6   :  { %107 = shalt.err (!%p104_p2)
}
   0x7   :  { %s108_s21 = scalar_lea.vmem %s17_s13, 768  ;;  %p113_p4 = scmp.lt.s32.totalorder %s17_s13, %s17_s13 }
   0x8   :  { %p109_p3 = scmp.ne.s32.totalorder %s17_s13, %s108_s21  ;;  %p114_p5 = scmp.lt.s32.totalorder %s108_s21, %s108_s21 }
   0xa   :  { %p115_p6 = por %p114_p5, %p113_p4 }
   0xc   :  { %p116_p7 = pnand %p115_p6, %p109_p3 }
   0xe   :  { %119 = shalt.err (!%p116_p7)
}
   0xf   :  { %19 = dma.hbm_to_vmem [thread:$0]  %s164_s0, 768, %s17_s13, [#allocation4]  }
  0x10   :  { %120 = dma.done.wait [#allocation4], 768  }
  0x11   :  { %121 = vsyncadd [#allocation4], 4294966528  ;;  %v36_v0 = vlaneseq  ;;  %v27_v6 = vld [vmem:[#allocation3] sm:$0xff]  ;;  %v28_v8 = vld [vmem:[#allocation3 + $0x8] sm:$0xff]  ;;  %v79_v32 = vstv %s166_s2  ;;  %vm86_vm0 = vcmask 7168  }
  0x12   :  { %v29_v9 = vld [vmem:[#allocation3 + $0x10] sm:$0xff]  ;;  %v33_v10 = vld [vmem:[%s165_s1] sm:$0x3f]  ;;  %v30_v16 = vld [vmem:[#allocation3 + $0x18] sm:$0xff] }
  0x13   :  { %v37_v1 = vshrl.u32 %v36_v0, 7  ;;  %v31_v21 = vld [vmem:[#allocation3 + $0x20] sm:$0xff]  ;;  %v32_v25 = vld [vmem:[#allocation3 + $0x28] sm:$0xff] }
  0x15   :  { %v38_v2 = vsub.s32 0, %v37_v1  ;;  %v42_v3 = vsub.s32 1, %v37_v1  ;;  %v46_v4 = vsub.s32 2, %v37_v1  ;;  %v50_v5 = vsub.s32 3, %v37_v1 }
  0x16   :  { %v54_v7 = vsub.s32 4, %v37_v1  ;;  %v58_v11 = vsub.s32 5, %v37_v1 }
  0x17   :  { %v39_v12 = vrot.slane %v33_v10, %v38_v2  ;;  %v43_v13 = vrot.slane %v33_v10, %v42_v3  ;;  %v47_v14 = vrot.slane %v33_v10, %v46_v4  ;;  %v51_v15 = vrot.slane %v33_v10, %v50_v5 }
  0x18   :  { %v55_v17 = vrot.slane %v33_v10, %v54_v7  ;;  %v59_v22 = vrot.slane %v33_v10, %v58_v11 }
  0x19   :  { %v66_v18 = vmul.f32 %v39_v12, %v27_v6  ;;  %v67_v19 = vmul.f32 %v43_v13, %v28_v8  ;;  %v68_v20 = vmul.f32 %v47_v14, %v29_v9  ;;  %v69_v23 = vmul.f32 %v51_v15, %v30_v16 }
  0x1a   :  { %v70_v26 = vmul.f32 %v55_v17, %v31_v21  ;;  %v71_v28 = vmul.f32 %v59_v22, %v32_v25 }
  0x1b   :  { %v72_v24 = vadd.f32 %v67_v19, %v66_v18 }
  0x1d   :  { %v73_v27 = vadd.f32 %v72_v24, %v68_v20 }
  0x1f   :  { %v74_v29 = vadd.f32 %v73_v27, %v69_v23 }
  0x21   :  { %v75_v30 = vadd.f32 %v74_v29, %v70_v26 }
  0x23   :  { %v76_v31 = vadd.f32 %v75_v30, %v71_v28 }
  0x25   :  { %77 = vadd.xlane.f32.xlu0 %v76_v31 }
  0xb2   :  { %v78_v33 = vpop.xlane.xlu0 %77 }
  0xb3   :  { %v80_v34 = vadd.f32 %v79_v32, %v78_v33 }
  0xb5   :  { %v81_v35 = vsub.f32 0.0, %v80_v34 }
  0xb7   :  { %v82_v36 = vmul.f32 1.442695, %v81_v35 }
  0xb9   :  { %94 = vpow2.f32 %v82_v36 }
  0xc3   :  { %v95_v37 = vpop.eup %94 }
  0xc4   :  { %v84_v38 = vadd.f32 1.0, %v95_v37 }
  0xc6   :  { %96 = vrcp.f32 %v84_v38 }
  0xd0   :  { %v97_v39 = vpop.eup %96 }
  0xd1   :  { %87 = vst.msk [vmem:[%s167_s3] sm:$0xff] %vm86_vm0, %v97_v39 }
  0xd2   :  { %92 = vsyncpa [#allocation4], 1 }

</bundles_post_ra>
